<compile_context>
chip_gen: v7x
topology: tpu7x:2x2x1
jax: 0.10.0
libtpu: 0.0.40
codegen_flags: <defaults>
</compile_context>

<pallas_src>
import jax
import jax.numpy as jnp
from jax import lax
from jax.experimental import pallas as pl
from jax.experimental.pallas import tpu as pltpu


def std3x3_kernel(x_ref, w_ref, scale_ref, shift_ref, o_ref):
    # x_ref:     (1, 1, strip+2, Wp, Cin)  zero-padded bf16 input strip (1-row halo)
    # w_ref:     (3, 3*Cin, Cout)          bf16 conv weights, layout [kw, kh*Cin + cin, cout]
    # scale_ref: (1, Cout) f32             eval-BN scale  (gamma * rsqrt(var + eps))
    # shift_ref: (1, Cout) f32             eval-BN shift  (beta - mean * scale)
    # o_ref:     (1, 1, strip, W, Cout)    bf16 output strip
    _, _, sp, wp, cin = x_ref.shape
    strip = sp - 2
    w_out = o_ref.shape[3]

    x = x_ref[0, 0]                                   # (strip+2, Wp, Cin) bf16

    # kh taps folded into the contraction dim: leading-dim slices are free
    # (untiled axis); one lane-axis concat -> (strip, Wp, 3*Cin) bf16.
    xk = jnp.concatenate([x[0:strip], x[1:strip + 1], x[2:strip + 2]], axis=-1)

    # Free re-tiling: Wp is a multiple of 16 (bf16 sublane tile) by wrapper
    # construction, so this reshape is a view, not a relayout copy.
    lhs = xk.reshape(strip * wp, 3 * cin)

    # One MXU dot per kw tap, K = 3*Cin, f32 accumulation.  The dots cover all
    # Wp columns; the extra zero-pad columns are harmless junk outputs.
    cout = o_ref.shape[4]
    ys = [
        jnp.dot(lhs, w_ref[kw], preferred_element_type=jnp.float32)
        .reshape(strip, wp, cout)
        for kw in range(3)
    ]

    # kw taps applied as column shifts of the f32 results (unpacked f32
    # unaligned sublane slices -- the proven-safe shift path) instead of
    # shifting the packed-bf16 input.
    acc = (ys[0][:, 0:w_out]
           + ys[1][:, 1:1 + w_out]
           + ys[2][:, 2:2 + w_out])                    # (strip, W, Cout) f32

    # Eval-mode BN on the f32 accumulator + ReLU, then one cast to bf16.
    out = jnp.maximum(acc * scale_ref[0, :] + shift_ref[0, :], 0.0)
    o_ref[0, 0] = out.astype(o_ref.dtype)


def standard3x3_conv_pallas(x_nchw, w_oihw, gamma, beta, run_mean, run_var,
                            eps=1e-5, *, strip=8,
                            compute_dtype=jnp.bfloat16,
                            out_dtype=jnp.bfloat16):
    """Standard3x3Conv forward (eval-mode BN).  x: (N,Cin,H,W) -> (N,Cout,H,W)."""
    N, Cin, H, W = x_nchw.shape
    Cout = w_oihw.shape[0]

    if H % strip != 0:
        strip = H                       # fallback: one strip per image
    S = H // strip
    Sp = strip + 2

    # Round the padded width up to a multiple of 16 so all in-kernel bf16/f32
    # reshapes are free re-tilings.  Extra columns are zeros and only produce
    # junk output columns >= W, which the kernel never reads or stores.
    Wp = ((W + 2 + 15) // 16) * 16
    pad_r = Wp - W - 1                  # >= 1

    # NCHW -> NHWC (channels on the 128-lane axis), cast to bf16, zero-pad.
    x_nhwc = jnp.transpose(x_nchw, (0, 2, 3, 1)).astype(compute_dtype)
    x_pad = jnp.pad(x_nhwc, ((0, 0), (1, 1), (1, pad_r), (0, 0)))

    # H-strips with a 1-row halo, materialized wrapper-side (duplicates only
    # 2 rows per strip) so the kernel BlockSpecs stay plain Blocked indexing.
    x_strips = jnp.stack(
        [x_pad[:, s * strip: s * strip + Sp] for s in range(S)], axis=1)
    # -> (N, S, Sp, Wp, Cin)

    # Weights: (O, I, KH, KW) -> (KW, KH*I, O), matching the kernel's kh-fold
    # channel order.  Kept UN-scaled in bf16; the BN scale is applied on the
    # f32 accumulator in-kernel so small running_var cannot amplify bf16
    # weight quantization error.
    w_k = jnp.transpose(w_oihw, (3, 2, 1, 0)).reshape(3, 3 * Cin, Cout)
    w_k = w_k.astype(compute_dtype)

    # TODO(synk): training-mode BN (batch statistics / running-stat updates)
    #             not implemented; this matches the PyTorch module in eval().
    scale = (gamma * lax.rsqrt(run_var + eps)).astype(jnp.float32)
    shift = (beta - run_mean * scale).astype(jnp.float32)
    scale = scale.reshape(1, Cout)
    shift = shift.reshape(1, Cout)

    out = pl.pallas_call(
        std3x3_kernel,
        out_shape=jax.ShapeDtypeStruct((N, S, strip, W, Cout), out_dtype),
        grid_spec=pltpu.PrefetchScalarGridSpec(
            num_scalar_prefetch=0,
            grid=(N, S),
            in_specs=[
                pl.BlockSpec((1, 1, Sp, Wp, Cin), lambda n, s: (n, s, 0, 0, 0)),
                pl.BlockSpec((3, 3 * Cin, Cout), lambda n, s: (0, 0, 0)),
                pl.BlockSpec((1, Cout), lambda n, s: (0, 0)),
                pl.BlockSpec((1, Cout), lambda n, s: (0, 0)),
            ],
            out_specs=pl.BlockSpec((1, 1, strip, W, Cout),
                                   lambda n, s: (n, s, 0, 0, 0)),
        ),
        compiler_params=pltpu.CompilerParams(
            # Batch and strip axes are both independent -> balanced megacore
            # sharding on v7x even for small/odd N; no-op on v5e/v6e.  For
            # production feature maps, sweep `strip` (larger on v6e, smaller
            # on v7x), consider pl.Buffered(3) on the input spec, and set
            # vmem_limit_bytes explicitly.
            dimension_semantics=("parallel", "parallel")),
    )(x_strips, w_k, scale, shift)

    # (N, S, strip, W, Cout) -> (N, H, W, Cout) -> NCHW
    out = out.reshape(N, H, W, Cout)
    return jnp.transpose(out, (0, 3, 1, 2))


def standard3x3_conv_ref(x_nchw, w_oihw, gamma, beta, run_mean, run_var,
                         eps=1e-5):
    """Pure-JAX f32 reference (matches the PyTorch forward in eval mode)."""
    y = lax.conv_general_dilated(x_nchw, w_oihw, (1, 1), ((1, 1), (1, 1)),
                                 dimension_numbers=('NCHW', 'OIHW', 'NCHW'))
    scale = gamma / jnp.sqrt(run_var + eps)
    shift = beta - run_mean * scale
    y = y * scale[None, :, None, None] + shift[None, :, None, None]
    return jnp.maximum(y, 0.0)


if __name__ == "__main__":
    key = jax.random.PRNGKey(0)
    k1, k2, k3, k4, k5, k6 = jax.random.split(key, 6)

    N, Cin, Cout, H, W = 2, 4, 8, 16, 16

    x = jax.random.normal(k1, (N, Cin, H, W), jnp.float32)
    # conv: nn.Conv2d(Cin, Cout, 3, stride=1, padding=1, bias=False)
    w = jax.random.normal(k2, (Cout, Cin, 3, 3), jnp.float32) * 0.3
    # BatchNorm2d(Cout): affine params + running stats (eval-mode semantics).
    gamma = 1.0 + 0.1 * jax.random.normal(k3, (Cout,), jnp.float32)
    beta = 0.1 * jax.random.normal(k4, (Cout,), jnp.float32)
    run_mean = 0.05 * jax.random.normal(k5, (Cout,), jnp.float32)
    run_var = 1.0 + 0.1 * jax.nn.softplus(
        jax.random.normal(k6, (Cout,), jnp.float32))

    out = jax.block_until_ready(
        standard3x3_conv_pallas(x, w, gamma, beta, run_mean, run_var))
    ref = standard3x3_conv_ref(x, w, gamma, beta, run_mean, run_var)

    assert out.shape == (N, Cout, H, W)
    out_f32 = out.astype(jnp.float32)
    max_err = float(jnp.max(jnp.abs(out_f32 - ref)))
    # Tolerance accounts for bf16 quantization of activations, weights and the
    # bf16 output cast against the f32 reference; accumulation is f32.
    assert jnp.allclose(out_f32, ref, atol=7e-2, rtol=3e-2), max_err
    print("KERNEL_OK")
</pallas_src>

<mosaic_0001>
module attributes {stable_mosaic.version = 11 : i64} {
  func.func @std3x3_kernel(%arg0: i32, %arg1: i32, %arg2: memref<1x1x10x32x4xbf16, #tpu.memory_space<vmem>>, %arg3: memref<3x12x8xbf16, #tpu.memory_space<vmem>>, %arg4: memref<1x8xf32, #tpu.memory_space<vmem>>, %arg5: memref<1x8xf32, #tpu.memory_space<vmem>>, %arg6: memref<1x1x8x16x8xbf16, #tpu.memory_space<vmem>>) attributes {dimension_semantics = [#tpu.dimension_semantics<parallel>, #tpu.dimension_semantics<parallel>], iteration_bounds = array<i64: 2, 2>, scalar_prefetch = 0 : i64, scratch_operands = 0 : i64, tpu.core_type = #tpu.core_type<tc>, window_params = [{transform_indices = @transform_0, window_bounds = array<i64: 1, 1, 10, 32, 4>}, {pipeline_mode = #tpu.pipeline_mode<synchronous>, transform_indices = @transform_1, window_bounds = array<i64: 3, 12, 8>}, {pipeline_mode = #tpu.pipeline_mode<synchronous>, transform_indices = @transform_2, window_bounds = array<i64: 1, 8>}, {pipeline_mode = #tpu.pipeline_mode<synchronous>, transform_indices = @transform_3, window_bounds = array<i64: 1, 8>}, {transform_indices = @transform_4, window_bounds = array<i64: 1, 1, 8, 16, 8>}]} {
    %c0 = arith.constant 0 : index
    %c0_0 = arith.constant 0 : index
    %c0_1 = arith.constant 0 : index
    %c0_2 = arith.constant 0 : index
    %c0_3 = arith.constant 0 : index
    %0 = vector.load %arg2[%c0, %c0_0, %c0_1, %c0_2, %c0_3] : memref<1x1x10x32x4xbf16, #tpu.memory_space<vmem>>, vector<1x1x10x32x4xbf16>
    %1 = vector.shape_cast %0 : vector<1x1x10x32x4xbf16> to vector<10x32x4xbf16>
    %2 = vector.extract_strided_slice %1 {offsets = [0, 0, 0], sizes = [8, 32, 4], strides = [1, 1, 1]} : vector<10x32x4xbf16> to vector<8x32x4xbf16>
    %3 = vector.extract_strided_slice %1 {offsets = [1, 0, 0], sizes = [8, 32, 4], strides = [1, 1, 1]} : vector<10x32x4xbf16> to vector<8x32x4xbf16>
    %4 = vector.extract_strided_slice %1 {offsets = [2, 0, 0], sizes = [8, 32, 4], strides = [1, 1, 1]} : vector<10x32x4xbf16> to vector<8x32x4xbf16>
    %5 = tpu.concatenate %2, %3, %4 in 2 : vector<8x32x4xbf16>, vector<8x32x4xbf16>, vector<8x32x4xbf16> -> vector<8x32x12xbf16>
    %6 = vector.shape_cast %5 : vector<8x32x12xbf16> to vector<256x12xbf16>
    %c0_4 = arith.constant 0 : index
    %c0_5 = arith.constant 0 : index
    %c0_6 = arith.constant 0 : index
    %7 = vector.load %arg3[%c0_4, %c0_5, %c0_6] : memref<3x12x8xbf16, #tpu.memory_space<vmem>>, vector<1x12x8xbf16>
    %8 = vector.shape_cast %7 : vector<1x12x8xbf16> to vector<12x8xbf16>
    %cst = arith.constant dense<0.000000e+00> : vector<256x8xf32>
    %9 = tpu.matmul %6, %8, %cst {dimension_numbers = #tpu.dot_dimension_numbers<[1], [0], [0], [1], [0, 0, 1, 1], [], []>} : vector<256x12xbf16>, vector<12x8xbf16>, vector<256x8xf32> -> vector<256x8xf32>
    %10 = vector.shape_cast %9 : vector<256x8xf32> to vector<8x32x8xf32>
    %c1 = arith.constant 1 : index
    %c0_7 = arith.constant 0 : index
    %c0_8 = arith.constant 0 : index
    %11 = vector.load %arg3[%c1, %c0_7, %c0_8] : memref<3x12x8xbf16, #tpu.memory_space<vmem>>, vector<1x12x8xbf16>
    %12 = vector.shape_cast %11 : vector<1x12x8xbf16> to vector<12x8xbf16>
    %cst_9 = arith.constant dense<0.000000e+00> : vector<256x8xf32>
    %13 = tpu.matmul %6, %12, %cst_9 {dimension_numbers = #tpu.dot_dimension_numbers<[1], [0], [0], [1], [0, 0, 1, 1], [], []>} : vector<256x12xbf16>, vector<12x8xbf16>, vector<256x8xf32> -> vector<256x8xf32>
    %14 = vector.shape_cast %13 : vector<256x8xf32> to vector<8x32x8xf32>
    %c2 = arith.constant 2 : index
    %c0_10 = arith.constant 0 : index
    %c0_11 = arith.constant 0 : index
    %15 = vector.load %arg3[%c2, %c0_10, %c0_11] : memref<3x12x8xbf16, #tpu.memory_space<vmem>>, vector<1x12x8xbf16>
    %16 = vector.shape_cast %15 : vector<1x12x8xbf16> to vector<12x8xbf16>
    %cst_12 = arith.constant dense<0.000000e+00> : vector<256x8xf32>
    %17 = tpu.matmul %6, %16, %cst_12 {dimension_numbers = #tpu.dot_dimension_numbers<[1], [0], [0], [1], [0, 0, 1, 1], [], []>} : vector<256x12xbf16>, vector<12x8xbf16>, vector<256x8xf32> -> vector<256x8xf32>
    %18 = vector.shape_cast %17 : vector<256x8xf32> to vector<8x32x8xf32>
    %19 = vector.extract_strided_slice %10 {offsets = [0, 0, 0], sizes = [8, 16, 8], strides = [1, 1, 1]} : vector<8x32x8xf32> to vector<8x16x8xf32>
    %20 = vector.extract_strided_slice %14 {offsets = [0, 1, 0], sizes = [8, 16, 8], strides = [1, 1, 1]} : vector<8x32x8xf32> to vector<8x16x8xf32>
    %21 = arith.addf %19, %20 : vector<8x16x8xf32>
    %22 = vector.extract_strided_slice %18 {offsets = [0, 2, 0], sizes = [8, 16, 8], strides = [1, 1, 1]} : vector<8x32x8xf32> to vector<8x16x8xf32>
    %23 = arith.addf %21, %22 : vector<8x16x8xf32>
    %c0_13 = arith.constant 0 : index
    %c0_14 = arith.constant 0 : index
    %24 = vector.load %arg4[%c0_13, %c0_14] : memref<1x8xf32, #tpu.memory_space<vmem>>, vector<1x8xf32>
    %25 = vector.shape_cast %24 : vector<1x8xf32> to vector<8xf32>
    %26 = vector.shape_cast %25 : vector<8xf32> to vector<1x1x8xf32>
    %27 = vector.broadcast %26 : vector<1x1x8xf32> to vector<8x16x8xf32>
    %28 = arith.mulf %23, %27 : vector<8x16x8xf32>
    %c0_15 = arith.constant 0 : index
    %c0_16 = arith.constant 0 : index
    %29 = vector.load %arg5[%c0_15, %c0_16] : memref<1x8xf32, #tpu.memory_space<vmem>>, vector<1x8xf32>
    %30 = vector.shape_cast %29 : vector<1x8xf32> to vector<8xf32>
    %31 = vector.shape_cast %30 : vector<8xf32> to vector<1x1x8xf32>
    %32 = vector.broadcast %31 : vector<1x1x8xf32> to vector<8x16x8xf32>
    %33 = arith.addf %28, %32 : vector<8x16x8xf32>
    %cst_17 = arith.constant 0.000000e+00 : f32
    %34 = vector.broadcast %cst_17 : f32 to vector<8x16x8xf32>
    %35 = arith.maximumf %33, %34 : vector<8x16x8xf32>
    %36 = arith.truncf %35 : vector<8x16x8xf32> to vector<8x16x8xbf16>
    %c0_18 = arith.constant 0 : index
    %c0_19 = arith.constant 0 : index
    %c0_20 = arith.constant 0 : index
    %c0_21 = arith.constant 0 : index
    %c0_22 = arith.constant 0 : index
    %37 = vector.load %arg6[%c0_18, %c0_19, %c0_20, %c0_21, %c0_22] : memref<1x1x8x16x8xbf16, #tpu.memory_space<vmem>>, vector<1x1x8x16x8xbf16>
    %38 = vector.shape_cast %37 : vector<1x1x8x16x8xbf16> to vector<8x16x8xbf16>
    %39 = vector.shape_cast %36 : vector<8x16x8xbf16> to vector<1x1x8x16x8xbf16>
    tpu.vector_store %arg6[%c0_18, %c0_19, %c0_20, %c0_21, %c0_22], %39 {strides = array<i32>} : memref<1x1x8x16x8xbf16, #tpu.memory_space<vmem>>, vector<1x1x8x16x8xbf16>,
    return
  }
  func.func @transform_0(%arg0: i32, %arg1: i32) -> (i32, i32, i32, i32, i32) {
    %c0_i32 = arith.constant 0 : i32
    %c0_i32_0 = arith.constant 0 : i32
    %c0_i32_1 = arith.constant 0 : i32
    %c0_i32_2 = arith.constant 0 : i32
    return %arg0, %arg1, %c0_i32, %c0_i32_0, %c0_i32_1 : i32, i32, i32, i32, i32
  }
  func.func @transform_1(%arg0: i32, %arg1: i32) -> (i32, i32, i32) {
    %c0_i32 = arith.constant 0 : i32
    %c0_i32_0 = arith.constant 0 : i32
    %c0_i32_1 = arith.constant 0 : i32
    %c0_i32_2 = arith.constant 0 : i32
    return %c0_i32, %c0_i32_0, %c0_i32_1 : i32, i32, i32
  }
  func.func @transform_2(%arg0: i32, %arg1: i32) -> (i32, i32) {
    %c0_i32 = arith.constant 0 : i32
    %c0_i32_0 = arith.constant 0 : i32
    %c0_i32_1 = arith.constant 0 : i32
    return %c0_i32, %c0_i32_0 : i32, i32
  }
  func.func @transform_3(%arg0: i32, %arg1: i32) -> (i32, i32) {
    %c0_i32 = arith.constant 0 : i32
    %c0_i32_0 = arith.constant 0 : i32
    %c0_i32_1 = arith.constant 0 : i32
    return %c0_i32, %c0_i32_0 : i32, i32
  }
  func.func @transform_4(%arg0: i32, %arg1: i32) -> (i32, i32, i32, i32, i32) {
    %c0_i32 = arith.constant 0 : i32
    %c0_i32_0 = arith.constant 0 : i32
    %c0_i32_1 = arith.constant 0 : i32
    %c0_i32_2 = arith.constant 0 : i32
    return %arg0, %arg1, %c0_i32, %c0_i32_0, %c0_i32_1 : i32, i32, i32, i32, i32
  }
}

</mosaic_0001>

<bundles_post_ra>
// kernel: tpu_custom_call.1
= control target key start
LH: loop header
LB: loop body
LE: loop exit
PB: predicated region body
PF: predicated region fallthrough
CT: control target
= control target key end

     0   :  { %s1882_s15 = smov 0   ;;  %s1884_s16 = smov 0   ;;  %s2323_s0 = inlined_call_operand.vmem [shape: bf16[2,2,10,32,4], index: 0, kind: input, shape index: {}]   ;;  %s2324_s1 = inlined_call_operand.vmem [shape: bf16[3,12,8], index: 1, kind: input, shape index: {}]   ;;  %s2325_s2 = inlined_call_operand.vmem [shape: f32[1,8], index: 2, kind: input, shape index: {}]   ;;  %s2326_s3 = inlined_call_operand.vmem [shape: f32[1,8], index: 3, kind: input, shape index: {}]   ;;  %s2327_s4 = inlined_call_operand.vmem [shape: bf16[2,2,8,16,8], index: 4, kind: output, shape index: {}]  }
   0x1   :  { %s1886_s17 = smov 0   ;;  %s1888_s18 = smov 0  }
   0x2   :  { %s1890_s19 = smov 0  }
   0x3 LB: > { %s23_s20 = sadd.s32 1, %s1845_s17  ;;  %s26_s21 = sadd.s32 1, %s1849_s18  ;;  %s1853_s19 = sphi %s1890_s19, %s14_s19   ;;  %s1849_s18 = sphi %s1888_s18, %s2331_s18   ;;  %s1845_s17 = sphi %s1886_s17, %s2330_s17   ;;  %s1841_s16 = sphi %s1884_s16, %s2329_s16   ;;  %s1837_s15 = sphi %s1882_s15, %s2328_s15  }
   0x4   : > { %p24_p0 = scmp.ge.s32.totalorder %s23_s20, 2  ;;  %p1473_p1 = scmp.ge.s32.totalorder %s1853_s19, 1 }
   0x5   : > { %p182_p2 = scmp.lt.s32.totalorder %s1853_s19, 5 }
   0x6   : > { %s2333_s20 = smov (%p24_p0, %s23_s20), 0  ;;  %s2335_s21 = smov (!%p24_p0, %s26_s21), %s1849_s18 }
   0x7   : > { %p183_p3 = pnand %p1473_p1, %p182_p2  ;;  %p28_p4 = scmp.ge.s32.totalorder %s2335_s21, 2 }
   0x8   : > { %p216_p5 = scmp.lt.s32.totalorder (!%p183_p3), %s1841_s16, 1  ;;  %p218_p6 = scmp.lt.s32.totalorder (!%p183_p3), %s1837_s15, 1  ;;  %v1811_v0 = vld [vmem:[%s2324_s1] sm:$0x3f] (!%p183_p3)   ;;  %vm561_vm0 = vcmask (!%p183_p3), 1045504   ;;  %vm439_vm1 = vcmask (!%p183_p3), 31744  }
   0x9   : > { %s2337_s21 = smov (%p28_p4, %s2335_s21), 0  ;;  %186 = sbr.rel (%p183_p3) target bundleno = 494 (0x1ee), region = 36 }
   0xa   : > { %1745 = vmatprep.subr.msk.bf16.mxu1 (!%p183_p3), %vm561_vm0, %v1811_v0  ;;  %v563_v1 = vsel (!%p183_p3), %vm561_vm0, %v1811_v0, 0  ;;  %1744 = vmatprep.subr.msk.bf16.mxu0 (!%p183_p3), %vm561_vm0, %v1811_v0  ;;  %s1855_s5 = smov (!%p183_p3), 8   ;;  %s1856_s6 = smov (!%p183_p3), 4   ;;  %v1813_v11 = vld [vmem:[%s2324_s1 + $0x8] sm:$0x3f] (!%p183_p3)   ;;  %vm488_vm2 = vcmask (!%p183_p3), 64512  }
   0xb   : > { %1743 = vmatpush3.bf16.msra.mxu1 (!%p183_p3), %v563_v1  ;;  %1641 = vmatpush3.bf16.msra.mxu0 (!%p183_p3), %v563_v1  ;;  %v1814_v15 = vld [vmem:[%s2324_s1 + $0x10] sm:$0x3f] (!%p183_p3)   ;;  %vm528_vm3 = vcmask (!%p183_p3), 97280   ;;  %v719_v33 = vsel (!%p183_p3), %vm561_vm0, %v1813_v11, 0  ;;  %vm1062_vm4 = vcmask (!%p183_p3), 1046528   ;;  %vm1357_vm5 = vcmask (!%p183_p3), 60416  }
   0xc   : > { %1746 = vmatprep.subr.msk.bf16.mxu1 (!%p183_p3), %vm561_vm0, %v1813_v11  ;;  %1747 = vmatprep.subr.msk.bf16.mxu0 (!%p183_p3), %vm561_vm0, %v1814_v15  ;;  %v883_v41 = vsel (!%p183_p3), %vm561_vm0, %v1814_v15, 0 }
  0x10   : > { %s2339_s16 = smov (!%p216_p5, %s1841_s16), 1  ;;  %s2341_s15 = smov (!%p218_p6, %s1837_s15), 1 }
  0x11   : > { %s1749_s24 = smul.u32 80, %s2339_s16  ;;  %s1475_s11 = sshll.u32 %s2341_s15, 4 }
  0x12   : > { %s1748_s25 = smul.u32 40, %s2341_s15  ;;  %s1476_s12 = sshll.u32 %s2339_s16, 5 }
  0x13   : > { %s231_s22 = sadd.s32 %s1476_s12, %s1475_s11 }
  0x14   : > { %s222_s26 = sadd.s32 %s1749_s24, %s1748_s25  ;;  %s1477_s16 = sshll.u32 %s231_s22, 2 }
  0x15   : > { %s1474_s27 = sshll.u32 %s222_s26, 2  ;;  %s2208_s26 = scalar_lea.vmem %s2327_s4, %s1477_s16 }
  0x16   : > { %s1927_s30 = scalar_lea.vmem %s2323_s0, %s1474_s27 }
  0x17   : > { %v1930_v2 = vld [vmem:[%s1927_s30 + $0x60] sm:$0xff]   ;;  %v1933_v3 = vld [vmem:[%s1927_s30 + $0x50] sm:$0xff]   ;;  %v1938_v4 = vld [vmem:[%s1927_s30 + $0x58] sm:$0xff]  }
  0x18   : > { %423 = vrot.lane.b32.xlu1 %v1930_v2, %s1855_s5  ;;  %381 = vrot.lane.b32.xlu0 %v1933_v3, %s1856_s6  ;;  %v1943_v5 = vld [vmem:[%s1927_s30 + $0x10] sm:$0xff]   ;;  %v1948_v6 = vld [vmem:[%s1927_s30 + $0x18] sm:$0xff]  }
  0x19   : > { %v1953_v7 = vld [vmem:[%s1927_s30 + $0x68] sm:$0xff]   ;;  %v1963_v9 = vld [vmem:[%s1927_s30 + $0x20] sm:$0xff]   ;;  %v1974_v10 = vld [vmem:[%s1927_s30 + $0x70] sm:$0xff]  }
  0x1a   : > { %v1958_v8 = vld [vmem:[%s1927_s30 + $0x28] sm:$0xff]   ;;  %v1984_v12 = vld [vmem:[%s1927_s30 + $0x78] sm:$0xff]   ;;  %v1995_v14 = vld [vmem:[%s1927_s30 + $0x30] sm:$0xff]  }
  0x1b   : > { %v1990_v13 = vld [vmem:[%s1927_s30 + $0x38] sm:$0xff]   ;;  %v1804_v16 = vld [vmem:[%s1927_s30 + $0x80] sm:$0xff]   ;;  %v1805_v17 = vld [vmem:[%s1927_s30 + $0x88] sm:$0xff]  }
  0x1c   : > { %365 = vrot.lane.b32.xlu1 %v1943_v5, %s1856_s6  ;;  %383 = vrot.lane.b32.xlu0 %v1938_v4, %s1856_s6  ;;  %v1807_v18 = vld [vmem:[%s1927_s30 + $0x48] sm:$0xff]   ;;  %v1806_v19 = vld [vmem:[%s1927_s30 + $0x40] sm:$0xff]  }
  0x1d   : > { %v1808_v20 = vld [vmem:[%s1927_s30 + $0x90] sm:$0xff]   ;;  %v1809_v21 = vld [vmem:[%s1927_s30 + $0x98] sm:$0xff]   ;;  %v1812_v29 = vld [vmem:[%s1927_s30 + $0x8] sm:$0xff]  }
  0x1e   : > { %v1810_v31 = vld [vmem:[%s1927_s30] sm:$0xff]  }
  0x20   : > { %367 = vrot.lane.b32.xlu1 %v1948_v6, %s1856_s6  ;;  %425 = vrot.lane.b32.xlu0 %v1953_v7, %s1855_s5 }
  0x24   : > { %409 = vrot.lane.b32.xlu1 %v1958_v8, %s1855_s5  ;;  %407 = vrot.lane.b32.xlu0 %v1963_v9, %s1855_s5 }
  0x28   : > { %387 = vrot.lane.b32.xlu1 %v1953_v7, %s1856_s6  ;;  %385 = vrot.lane.b32.xlu0 %v1930_v2, %s1856_s6 }
  0x2c   : > { %369 = vrot.lane.b32.xlu1 %v1963_v9, %s1856_s6  ;;  %427 = vrot.lane.b32.xlu0 %v1974_v10, %s1855_s5 }
  0x30   : > { %371 = vrot.lane.b32.xlu1 %v1958_v8, %s1856_s6  ;;  %429 = vrot.lane.b32.xlu0 %v1984_v12, %s1855_s5 }
  0x34   : > { %413 = vrot.lane.b32.xlu1 %v1990_v13, %s1855_s5  ;;  %411 = vrot.lane.b32.xlu0 %v1995_v14, %s1855_s5 }
  0x38   : > { %391 = vrot.lane.b32.xlu1 %v1984_v12, %s1856_s6  ;;  %389 = vrot.lane.b32.xlu0 %v1974_v10, %s1856_s6 }
  0x3c   : > { %373 = vrot.lane.b32.xlu1 %v1995_v14, %s1856_s6  ;;  %431 = vrot.lane.b32.xlu0 %v1804_v16, %s1855_s5 }
  0x40   : > { %375 = vrot.lane.b32.xlu1 %v1990_v13, %s1856_s6  ;;  %433 = vrot.lane.b32.xlu0 %v1805_v17, %s1855_s5 }
  0x44   : > { %417 = vrot.lane.b32.xlu1 %v1807_v18, %s1855_s5  ;;  %415 = vrot.lane.b32.xlu0 %v1806_v19, %s1855_s5 }
  0x48   : > { %395 = vrot.lane.b32.xlu1 %v1805_v17, %s1856_s6  ;;  %393 = vrot.lane.b32.xlu0 %v1804_v16, %s1856_s6 }
  0x4c   : > { %377 = vrot.lane.b32.xlu1 %v1806_v19, %s1856_s6  ;;  %435 = vrot.lane.b32.xlu0 %v1808_v20, %s1855_s5 }
  0x50   : > { %379 = vrot.lane.b32.xlu1 %v1807_v18, %s1856_s6  ;;  %437 = vrot.lane.b32.xlu0 %v1809_v21, %s1855_s5 }
  0x54   : > { %421 = vrot.lane.b32.xlu1 %v1938_v4, %s1855_s5  ;;  %419 = vrot.lane.b32.xlu0 %v1933_v3, %s1855_s5 }
  0x8a   : > { %v424_v22 = vpop.permute.xlu1 %423  ;;  %v382_v23 = vpop.permute.xlu0 %381 }
  0x8b   : > { %v466_v24 = vsel %vm439_vm1, %v1806_v19, %v382_v23 }
  0x8c   : > { %v2035_v25 = vsel %vm488_vm2, %v466_v24, %v424_v22 }
  0x8d   : > { %1658 = vmatprep.mubr.msk.bf16.mxu1 %vm528_vm3, %v2035_v25 }
  0x8e   : > { %v366_v26 = vpop.permute.xlu1 %365  ;;  %v384_v27 = vpop.permute.xlu0 %383 }
  0x8f   : > { %v469_v30 = vsel %vm439_vm1, %v1807_v18, %v384_v27  ;;  %v442_v37 = vsel %vm439_vm1, %v1810_v31, %v366_v26 }
  0x92   : > { %v368_v28 = vpop.permute.xlu1 %367  ;;  %v426_v32 = vpop.permute.xlu0 %425 }
  0x93   : > { %v2044_v34 = vsel %vm488_vm2, %v469_v30, %v426_v32  ;;  %v445_v35 = vsel %vm439_vm1, %v1812_v29, %v368_v28 }
  0x94   : > { %1659 = vmatmul.mubr.msk.bf16.vlgmr.msra.gmra.mrb[0].mxu1 %vm528_vm3, %v2044_v34 }
  0x95   : > { %1675 = vmatpush3.bf16.msra.mxu1 %v719_v33 }
  0x96   : > { %v410_v36 = vpop.permute.xlu1 %409  ;;  %v408_v38 = vpop.permute.xlu0 %407 }
  0x97   : > { %v2051_v39 = vsel %vm488_vm2, %v445_v35, %v410_v36  ;;  %v2054_v40 = vsel %vm488_vm2, %v442_v37, %v408_v38 }
  0x98   : > { %1642 = vmatprep.mubr.msk.bf16.mxu0 %vm528_vm3, %v2054_v40 }
  0x99   : > { %1643 = vmatmul.mubr.msk.bf16.vlgmr.msra.gmra.mrb[0].mxu0 %vm528_vm3, %v2051_v39 }
  0x9a   : > { %v388_v42 = vpop.permute.xlu1 %387  ;;  %v386_v43 = vpop.permute.xlu0 %385  ;;  %1709 = vmatpush3.bf16.msra.mxu0 %v883_v41 }
  0x9b   : > { %v472_v45 = vsel %vm439_vm1, %v1933_v3, %v386_v43  ;;  %v475_v49 = vsel %vm439_vm1, %v1938_v4, %v388_v42 }
  0x9e   : > { %v370_v44 = vpop.permute.xlu1 %369  ;;  %v428_v46 = vpop.permute.xlu0 %427 }
  0x9f   : > { %v2064_v47 = vsel %vm488_vm2, %v472_v45, %v428_v46  ;;  %v448_v54 = vsel %vm439_vm1, %v1943_v5, %v370_v44 }
  0xa0   : > { %1662 = vmatprep.mubr.msk.bf16.mxu1 %vm528_vm3, %v2064_v47 }
  0xa2   : > { %v372_v48 = vpop.permute.xlu1 %371  ;;  %v430_v50 = vpop.permute.xlu0 %429 }
  0xa3   : > { %v2071_v51 = vsel %vm488_vm2, %v475_v49, %v430_v50  ;;  %v451_v52 = vsel %vm439_vm1, %v1948_v6, %v372_v48 }
  0xa4   : > { %1663 = vmatmul.mubr.msk.bf16.gmra.mrb[4].mxu1 %vm528_vm3, %v2071_v51 }
  0xa6   : > { %v414_v53 = vpop.permute.xlu1 %413  ;;  %v412_v55 = vpop.permute.xlu0 %411 }
  0xa7   : > { %v496_v56 = vsel %vm488_vm2, %v451_v52, %v414_v53  ;;  %v494_v57 = vsel %vm488_vm2, %v448_v54, %v412_v55 }
  0xa8   : > { %1646 = vmatprep.mubr.msk.bf16.mxu0 %vm528_vm3, %v494_v57 }
  0xa9   : > { %1647 = vmatmul.mubr.msk.bf16.gmra.mrb[4].mxu0 %vm528_vm3, %v496_v56 }
  0xaa   : > { %v392_v58 = vpop.permute.xlu1 %391  ;;  %v390_v59 = vpop.permute.xlu0 %389 }
  0xab   : > { %v478_v61 = vsel %vm439_vm1, %v1930_v2, %v390_v59  ;;  %v481_v1 = vsel %vm439_vm1, %v1953_v7, %v392_v58 }
  0xae   : > { %v374_v60 = vpop.permute.xlu1 %373  ;;  %v432_v62 = vpop.permute.xlu0 %431 }
  0xaf   : > { %v514_v63 = vsel %vm488_vm2, %v478_v61, %v432_v62  ;;  %v454_v2 = vsel %vm439_vm1, %v1963_v9, %v374_v60 }
  0xb0   : > { %1666 = vmatprep.mubr.msk.bf16.mxu1 %vm528_vm3, %v514_v63 }
  0xb2   : > { %v376_v0 = vpop.permute.xlu1 %375  ;;  %v434_v3 = vpop.permute.xlu0 %433 }
  0xb3   : > { %v516_v4 = vsel %vm488_vm2, %v481_v1, %v434_v3  ;;  %v457_v5 = vsel %vm439_vm1, %v1958_v8, %v376_v0 }
  0xb4   : > { %1667 = vmatmul.mubr.msk.bf16.gmra.mrb[8].mxu1 %vm528_vm3, %v516_v4 }
  0xb6   : > { %v418_v6 = vpop.permute.xlu1 %417  ;;  %v416_v11 = vpop.permute.xlu0 %415 }
  0xb7   : > { %v500_v15 = vsel %vm488_vm2, %v457_v5, %v418_v6  ;;  %v498_v16 = vsel %vm488_vm2, %v454_v2, %v416_v11 }
  0xb8   : > { %1650 = vmatprep.mubr.msk.bf16.mxu0 %vm528_vm3, %v498_v16 }
  0xb9   : > { %1651 = vmatmul.mubr.msk.bf16.gmra.mrb[8].mxu0 %vm528_vm3, %v500_v15 }
  0xba   : > { %v396_v7 = vpop.permute.xlu1 %395  ;;  %v394_v17 = vpop.permute.xlu0 %393 }
  0xbb   : > { %v484_v19 = vsel %vm439_vm1, %v1974_v10, %v394_v17  ;;  %v487_v21 = vsel %vm439_vm1, %v1984_v12, %v396_v7 }
  0xbe   : > { %v378_v18 = vpop.permute.xlu1 %377  ;;  %v436_v8 = vpop.permute.xlu0 %435 }
  0xbf   : > { %v518_v20 = vsel %vm488_vm2, %v484_v19, %v436_v8  ;;  %v460_v26 = vsel %vm439_vm1, %v1995_v14, %v378_v18 }
  0xc0   : > { %1670 = vmatprep.mubr.msk.bf16.mxu1 %vm528_vm3, %v518_v20 }
  0xc2   : > { %v380_v9 = vpop.permute.xlu1 %379  ;;  %v438_v22 = vpop.permute.xlu0 %437 }
  0xc3   : > { %v520_v23 = vsel %vm488_vm2, %v487_v21, %v438_v22  ;;  %v463_v24 = vsel %vm439_vm1, %v1990_v13, %v380_v9  ;;  %v2192_v22 = vld [vmem:[%s2325_s2] ss:$0 sm:$0xff] }
  0xc4   : > { %1671 = vmatmul.mubr.msk.bf16.gmra.mrb[12].mxu1 %vm528_vm3, %v520_v23 }
  0xc5   : > { %1676 = vmatprep.mubr.msk.bf16.mxu1 %vm528_vm3, %v2054_v40 }
  0xc6   : > { %v422_v10 = vpop.permute.xlu1 %421  ;;  %v420_v27 = vpop.permute.xlu0 %419 }
  0xc7   : > { %v504_v28 = vsel %vm488_vm2, %v463_v24, %v422_v10  ;;  %v502_v12 = vsel %vm488_vm2, %v460_v26, %v420_v27 }
  0xc8   : > { %1654 = vmatprep.mubr.msk.bf16.mxu0 %vm528_vm3, %v502_v12 }
  0xc9   : > { %1655 = vmatmul.mubr.msk.bf16.gmra.mrb[12].mxu0 %vm528_vm3, %v504_v28 }
  0xca   : > { %1710 = vmatprep.mubr.msk.bf16.mxu0 %vm528_vm3, %v2054_v40 }
  0xcc   : > { %1677 = vmatmul.mubr.msk.bf16.vlgmr.msra.gmra.mrb[16].mxu1 %vm528_vm3, %v2051_v39 }
  0xcd   : > { %1680 = vmatprep.mubr.msk.bf16.mxu1 %vm528_vm3, %v494_v57 }
  0xd1   : > { %1711 = vmatmul.mubr.msk.bf16.vlgmr.msra.gmra.mrb[16].mxu0 %vm528_vm3, %v2051_v39 }
  0xd2   : > { %1714 = vmatprep.mubr.msk.bf16.mxu0 %vm528_vm3, %v494_v57 }
  0xd4   : > { %1681 = vmatmul.mubr.msk.bf16.gmra.mrb[20].mxu1 %vm528_vm3, %v496_v56 }
  0xd5   : > { %1684 = vmatprep.mubr.msk.bf16.mxu1 %vm528_vm3, %v498_v16 }
  0xd9   : > { %1715 = vmatmul.mubr.msk.bf16.gmra.mrb[20].mxu0 %vm528_vm3, %v496_v56 }
  0xda   : > { %1718 = vmatprep.mubr.msk.bf16.mxu0 %vm528_vm3, %v498_v16 }
  0xdc   : > { %1685 = vmatmul.mubr.msk.bf16.gmra.mrb[24].mxu1 %vm528_vm3, %v500_v15 }
  0xdd   : > { %1688 = vmatprep.mubr.msk.bf16.mxu1 %vm528_vm3, %v502_v12 }
  0xe1   : > { %1719 = vmatmul.mubr.msk.bf16.gmra.mrb[24].mxu0 %vm528_vm3, %v500_v15 }
  0xe2   : > { %1722 = vmatprep.mubr.msk.bf16.mxu0 %vm528_vm3, %v502_v12 }
  0xe4   : > { %1689 = vmatmul.mubr.msk.bf16.gmra.mrb[28].mxu1 %vm528_vm3, %v504_v28 }
  0xe5   : > { %1692 = vmatprep.mubr.msk.bf16.mxu1 %vm528_vm3, %v2035_v25 }
  0xe9   : > { %1723 = vmatmul.mubr.msk.bf16.gmra.mrb[28].mxu0 %vm528_vm3, %v504_v28  ;;  %v2197_v28 = vld [vmem:[%s2326_s3] ss:$0 sm:$0xff] }
  0xea   : > { %1726 = vmatprep.mubr.msk.bf16.mxu0 %vm528_vm3, %v2035_v25 }
  0xec   : > { %1693 = vmatmul.mubr.msk.bf16.gmra.mrb[32].mxu1 %vm528_vm3, %v2044_v34 }
  0xed   : > { %1696 = vmatprep.mubr.msk.bf16.mxu1 %vm528_vm3, %v2064_v47 }
  0xf1   : > { %1727 = vmatmul.mubr.msk.bf16.gmra.mrb[32].mxu0 %vm528_vm3, %v2044_v34 }
  0xf2   : > { %1730 = vmatprep.mubr.msk.bf16.mxu0 %vm528_vm3, %v2064_v47 }
  0xf4   : > { %1697 = vmatmul.mubr.msk.bf16.gmra.mrb[36].mxu1 %vm528_vm3, %v2071_v51 }
  0xf5   : > { %1700 = vmatprep.mubr.msk.bf16.mxu1 %vm528_vm3, %v514_v63 }
  0xf9   : > { %1731 = vmatmul.mubr.msk.bf16.gmra.mrb[36].mxu0 %vm528_vm3, %v2071_v51 }
  0xfa   : > { %1734 = vmatprep.mubr.msk.bf16.mxu0 %vm528_vm3, %v514_v63 }
  0xfc   : > { %1701 = vmatmul.mubr.msk.bf16.gmra.mrb[40].mxu1 %vm528_vm3, %v516_v4 }
  0xfd   : > { %1704 = vmatprep.mubr.msk.bf16.mxu1 %vm528_vm3, %v518_v20 }
 0x101   : > { %1735 = vmatmul.mubr.msk.bf16.gmra.mrb[40].mxu0 %vm528_vm3, %v516_v4 }
 0x102   : > { %1738 = vmatprep.mubr.msk.bf16.mxu0 %vm528_vm3, %v518_v20 }
 0x104   : > { %1705 = vmatmul.mubr.msk.bf16.gmra.mrb[44].mxu1 %vm528_vm3, %v520_v23 }
 0x109   : > { %1739 = vmatmul.mubr.msk.bf16.gmra.mrb[44].mxu0 %vm528_vm3, %v520_v23 }
 0x167   : > { %v1660_v13 = vpop.f32.mrb[0].mxu1 }
 0x168   : > { %v2159_v14 = vpop.f32.mrb[1].mxu1 }
 0x169   : > { %v1661_v25 = vpop.f32.mrb[2].mxu1 }
 0x16a   : > { %v2161_v29 = vpop.f32.mrb[3].mxu1 }
 0x16c   : > { %v1644_v30 = vpop.f32.mrb[0].mxu0 }
 0x16d   : > { %v599_v31 = vpop.f32.mrb[1].mxu0 }
 0x16e   : > { %v1645_v32 = vpop.f32.mrb[2].mxu0 }
 0x16f   : > { %v602_v33 = vpop.f32.mrb[3].mxu0 }
 0x177   : > { %v1664_v34 = vpop.f32.mrb[4].mxu1 }
 0x178   : > { %v2163_v35 = vpop.f32.mrb[5].mxu1 }
 0x179   : > { %v1665_v36 = vpop.f32.mrb[6].mxu1 }
 0x17a   : > { %v2165_v37 = vpop.f32.mrb[7].mxu1 }
 0x17c   : > { %v1648_v38 = vpop.f32.mrb[4].mxu0 }
 0x17d   : > { %v613_v39 = vpop.f32.mrb[5].mxu0 }
 0x17e   : > { %v1649_v40 = vpop.f32.mrb[6].mxu0 }
 0x17f   : > { %v616_v41 = vpop.f32.mrb[7].mxu0 }
 0x187   : > { %v1668_v42 = vpop.f32.mrb[8].mxu1 }
 0x188   : > { %v2167_v43 = vpop.f32.mrb[9].mxu1 }
 0x189   : > { %v1669_v44 = vpop.f32.mrb[10].mxu1 }
 0x18a   : > { %v2169_v45 = vpop.f32.mrb[11].mxu1 }
 0x18c   : > { %v1652_v46 = vpop.f32.mrb[8].mxu0 }
 0x18d   : > { %v2171_v47 = vpop.f32.mrb[9].mxu0 }
 0x18e   : > { %v1653_v48 = vpop.f32.mrb[10].mxu0 }
 0x18f   : > { %v2173_v49 = vpop.f32.mrb[11].mxu0 }
 0x197   : > { %v1672_v50 = vpop.f32.mrb[12].mxu1 }
 0x198   : > { %v2175_v51 = vpop.f32.mrb[13].mxu1 }
 0x199   : > { %v1673_v52 = vpop.f32.mrb[14].mxu1 }
 0x19a   : > { %v2177_v53 = vpop.f32.mrb[15].mxu1 }
 0x19c   : > { %v1656_v54 = vpop.f32.mrb[12].mxu0 }
 0x19d   : > { %v2179_v55 = vpop.f32.mrb[13].mxu0 }
 0x19e   : > { %v1657_v56 = vpop.f32.mrb[14].mxu0 }
 0x19f   : > { %v2181_v57 = vpop.f32.mrb[15].mxu0  ;;  %v1678_v58 = vpop.f32.mrb[16].mxu1 }
 0x1a0   : > { %v755_v59 = vpop.f32.mrb[17].mxu1  ;;  %v1066_v62 = vrot.slane %v1678_v58, 1 }
 0x1a1   : > { %v1679_v60 = vpop.f32.mrb[18].mxu1  ;;  %v1063_v63 = vrot.slane %v755_v59, 1 }
 0x1a2   : > { %v758_v61 = vpop.f32.mrb[19].mxu1 }
 0x1a3   : > { %v1064_v0 = vrot.slane %v758_v61, 1 }
 0x1a4   : > { %v1712_v1 = vpop.f32.mrb[16].mxu0 }
 0x1a5   : > { %v1065_v3 = vsel %vm1062_vm4, %v1063_v63, %v1064_v0  ;;  %v1067_v4 = vsel %vm1062_vm4, %v1064_v0, %v1066_v62  ;;  %v919_v5 = vpop.f32.mrb[17].mxu0  ;;  %v1162_v7 = vrot.slane %v1712_v1, 2 }
 0x1a6   : > { %v1119_v6 = vadd.f32 %v1065_v3, %v599_v31  ;;  %v1120_v2 = vadd.f32 %v1067_v4, %v602_v33  ;;  %v1713_v11 = vpop.f32.mrb[18].mxu0  ;;  %v1159_v17 = vrot.slane %v919_v5, 2 }
 0x1a7   : > { %v1682_v15 = vpop.f32.mrb[20].mxu1  ;;  %v922_v16 = vpop.f32.mrb[19].mxu0 }
 0x1a8   : > { %v1160_v18 = vrot.slane %v922_v16, 2  ;;  %v770_v19 = vpop.f32.mrb[21].mxu1  ;;  %v1071_v20 = vrot.slane %v1682_v15, 1 }
 0x1a9   : > { %v1683_v8 = vpop.f32.mrb[22].mxu1  ;;  %v1068_v26 = vrot.slane %v770_v19, 1 }
 0x1aa   : > { %v1161_v9 = vsel %vm561_vm0, %v1159_v17, %v1160_v18  ;;  %v1163_v21 = vsel %vm561_vm0, %v1160_v18, %v1162_v7  ;;  %v773_v23 = vpop.f32.mrb[23].mxu1 }
 0x1ab   : > { %v1215_v24 = vadd.f32 %v1161_v9, %v1119_v6  ;;  %v1216_v10 = vadd.f32 %v1163_v21, %v1120_v2  ;;  %v1069_v27 = vrot.slane %v773_v23, 1 }
 0x1ac   : > { %v1716_v12 = vpop.f32.mrb[20].mxu0 }
 0x1ad   : > { %v1238_v13 = vmul.f32 %v2192_v22, %v1215_v24  ;;  %v1239_v25 = vmul.f32 %v2192_v22, %v1216_v10  ;;  %v1070_v30 = vsel %vm1062_vm4, %v1068_v26, %v1069_v27  ;;  %v1072_v31 = vsel %vm1062_vm4, %v1069_v27, %v1071_v20  ;;  %v934_v32 = vpop.f32.mrb[21].mxu0 }
 0x1ae   : > { %v1121_v33 = vadd.f32 %v1070_v30, %v613_v39  ;;  %v1122_v34 = vadd.f32 %v1072_v31, %v616_v41  ;;  %v1717_v36 = vpop.f32.mrb[22].mxu0  ;;  %v1167_v46 = vrot.slane %v1716_v12, 2  ;;  %v1164_v48 = vrot.slane %v934_v32, 2 }
 0x1af   : > { %v1261_v38 = vadd.f32 %v2197_v28, %v1238_v13  ;;  %v1262_v40 = vadd.f32 %v2197_v28, %v1239_v25  ;;  %v1686_v42 = vpop.f32.mrb[24].mxu1  ;;  %v937_v44 = vpop.f32.mrb[23].mxu0 }
 0x1b0   : > { %v1165_v50 = vrot.slane %v937_v44, 2  ;;  %v785_v52 = vpop.f32.mrb[25].mxu1  ;;  %v1076_v0 = vrot.slane %v1686_v42, 1 }
 0x1b1   : > { %v1277_v54 = vmax.f32 %v1261_v38, 0.0  ;;  %v1278_v56 = vmax.f32 %v1262_v40, 0.0  ;;  %v1687_v58 = vpop.f32.mrb[26].mxu1  ;;  %v1073_v1 = vrot.slane %v785_v52, 1 }
 0x1b2   : > { %v1166_v39 = vsel %vm561_vm0, %v1164_v48, %v1165_v50  ;;  %v1168_v41 = vsel %vm561_vm0, %v1165_v50, %v1167_v46  ;;  %v788_v59 = vpop.f32.mrb[27].mxu1 }
 0x1b3   : > { %v1573_v60 = vpack.c.bf16 %v1277_v54, %v1277_v54  ;;  %v1574_v61 = vpack.c.bf16 %v1278_v56, %v1278_v56  ;;  %v1217_v62 = vadd.f32 %v1166_v39, %v1121_v33  ;;  %v1218_v63 = vadd.f32 %v1168_v41, %v1122_v34 }
 0x1b4   : > { %v1074_v3 = vrot.slane %v788_v59, 1  ;;  %v1720_v4 = vpop.f32.mrb[24].mxu0 }
 0x1b5   : > { %1358 = vst.msk [vmem:[%s2208_s26] sm:$0xf] %vm1357_vm5, %v1573_v60  ;;  %1359 = vst.msk [vmem:[%s2208_s26 + $0x4] sm:$0xf] %vm1357_vm5, %v1574_v61  ;;  %v1240_v5 = vmul.f32 %v2192_v22, %v1217_v62  ;;  %v1241_v6 = vmul.f32 %v2192_v22, %v1218_v63  ;;  %v949_v2 = vpop.f32.mrb[25].mxu0  ;;  %v1172_v9 = vrot.slane %v1720_v4, 2 }
 0x1b6   : > { %v1075_v11 = vsel %vm1062_vm4, %v1073_v1, %v1074_v3  ;;  %v1077_v15 = vsel %vm1062_vm4, %v1074_v3, %v1076_v0  ;;  %v1721_v16 = vpop.f32.mrb[26].mxu0  ;;  %v1169_v21 = vrot.slane %v949_v2, 2 }
 0x1b7   : > { %v1263_v7 = vadd.f32 %v2197_v28, %v1240_v5  ;;  %v1264_v17 = vadd.f32 %v2197_v28, %v1241_v6  ;;  %v1123_v18 = vadd.f32 %v1075_v11, %v2171_v47  ;;  %v1124_v19 = vadd.f32 %v1077_v15, %v2173_v49  ;;  %v1690_v8 = vpop.f32.mrb[28].mxu1  ;;  %v952_v20 = vpop.f32.mrb[27].mxu0 }
 0x1b8   : > { %v1170_v23 = vrot.slane %v952_v20, 2  ;;  %v800_v24 = vpop.f32.mrb[29].mxu1  ;;  %v1081_v32 = vrot.slane %v1690_v8, 1 }
 0x1b9   : > { %v1279_v10 = vmax.f32 %v1263_v7, 0.0  ;;  %v1280_v26 = vmax.f32 %v1264_v17, 0.0  ;;  %v1691_v27 = vpop.f32.mrb[30].mxu1  ;;  %v1078_v33 = vrot.slane %v800_v24, 1 }
 0x1ba   : > { %v1171_v12 = vsel %vm561_vm0, %v1169_v21, %v1170_v23  ;;  %v1173_v13 = vsel %vm561_vm0, %v1170_v23, %v1172_v9  ;;  %v803_v25 = vpop.f32.mrb[31].mxu1 }
 0x1bb   : > { %v1575_v30 = vpack.c.bf16 %v1279_v10, %v1279_v10  ;;  %v1576_v47 = vpack.c.bf16 %v1280_v26, %v1280_v26  ;;  %v1219_v31 = vadd.f32 %v1171_v12, %v1123_v18  ;;  %v1220_v49 = vadd.f32 %v1173_v13, %v1124_v19 }
 0x1bc   : > { %v1079_v34 = vrot.slane %v803_v25, 1  ;;  %v1724_v36 = vpop.f32.mrb[28].mxu0 }
 0x1bd   : > { %1360 = vst.msk [vmem:[%s2208_s26 + $0x8] sm:$0xf] %vm1357_vm5, %v1575_v30  ;;  %1361 = vst.msk [vmem:[%s2208_s26 + $0xc] sm:$0xf] %vm1357_vm5, %v1576_v47  ;;  %v1242_v38 = vmul.f32 %v2192_v22, %v1219_v31  ;;  %v1243_v40 = vmul.f32 %v2192_v22, %v1220_v49  ;;  %v964_v42 = vpop.f32.mrb[29].mxu0  ;;  %v1177_v41 = vrot.slane %v1724_v36, 2 }
 0x1be   : > { %v1080_v44 = vsel %vm1062_vm4, %v1078_v33, %v1079_v34  ;;  %v1082_v46 = vsel %vm1062_vm4, %v1079_v34, %v1081_v32  ;;  %v1725_v48 = vpop.f32.mrb[30].mxu0  ;;  %v1174_v59 = vrot.slane %v964_v42, 2 }
 0x1bf   : > { %v1265_v50 = vadd.f32 %v2197_v28, %v1242_v38  ;;  %v1266_v52 = vadd.f32 %v2197_v28, %v1243_v40  ;;  %v1125_v54 = vadd.f32 %v1080_v44, %v2179_v55  ;;  %v1126_v56 = vadd.f32 %v1082_v46, %v2181_v57  ;;  %v1694_v58 = vpop.f32.mrb[32].mxu1  ;;  %v967_v39 = vpop.f32.mrb[31].mxu0 }
 0x1c0   : > { %v1175_v60 = vrot.slane %v967_v39, 2  ;;  %v815_v61 = vpop.f32.mrb[33].mxu1  ;;  %v1086_v2 = vrot.slane %v1694_v58, 1 }
 0x1c1   : > { %v1281_v62 = vmax.f32 %v1265_v50, 0.0  ;;  %v1282_v63 = vmax.f32 %v1266_v52, 0.0  ;;  %v1695_v0 = vpop.f32.mrb[34].mxu1  ;;  %v1083_v11 = vrot.slane %v815_v61, 1 }
 0x1c2   : > { %v1176_v1 = vsel %vm561_vm0, %v1174_v59, %v1175_v60  ;;  %v1178_v3 = vsel %vm561_vm0, %v1175_v60, %v1177_v41  ;;  %v818_v4 = vpop.f32.mrb[35].mxu1 }
 0x1c3   : > { %v1577_v5 = vpack.c.bf16 %v1281_v62, %v1281_v62  ;;  %v1578_v55 = vpack.c.bf16 %v1282_v63, %v1282_v63  ;;  %v1221_v6 = vadd.f32 %v1176_v1, %v1125_v54  ;;  %v1222_v57 = vadd.f32 %v1178_v3, %v1126_v56 }
 0x1c4   : > { %v1084_v15 = vrot.slane %v818_v4, 1  ;;  %v1728_v16 = vpop.f32.mrb[32].mxu0 }
 0x1c5   : > { %1362 = vst.msk [vmem:[%s2208_s26 + $0x10] sm:$0xf] %vm1357_vm5, %v1577_v5  ;;  %1363 = vst.msk [vmem:[%s2208_s26 + $0x14] sm:$0xf] %vm1357_vm5, %v1578_v55  ;;  %v1244_v7 = vmul.f32 %v2192_v22, %v1221_v6  ;;  %v1245_v17 = vmul.f32 %v2192_v22, %v1222_v57  ;;  %v979_v18 = vpop.f32.mrb[33].mxu0  ;;  %v1182_v27 = vrot.slane %v1728_v16, 2 }
 0x1c6   : > { %v1085_v19 = vsel %vm1062_vm4, %v1083_v11, %v1084_v15  ;;  %v1087_v8 = vsel %vm1062_vm4, %v1084_v15, %v1086_v2  ;;  %v1729_v20 = vpop.f32.mrb[34].mxu0  ;;  %v1179_v12 = vrot.slane %v979_v18, 2 }
 0x1c7   : > { %v1267_v9 = vadd.f32 %v2197_v28, %v1244_v7  ;;  %v1268_v21 = vadd.f32 %v2197_v28, %v1245_v17  ;;  %v1127_v23 = vadd.f32 %v1085_v19, %v2159_v14  ;;  %v1128_v24 = vadd.f32 %v1087_v8, %v2161_v29  ;;  %v1698_v10 = vpop.f32.mrb[36].mxu1  ;;  %v982_v26 = vpop.f32.mrb[35].mxu0 }
 0x1c8   : > { %v1180_v13 = vrot.slane %v982_v26, 2  ;;  %v830_v25 = vpop.f32.mrb[37].mxu1  ;;  %v1091_v38 = vrot.slane %v1698_v10, 1 }
 0x1c9   : > { %v1283_v30 = vmax.f32 %v1267_v9, 0.0  ;;  %v1284_v47 = vmax.f32 %v1268_v21, 0.0  ;;  %v1699_v31 = vpop.f32.mrb[38].mxu1  ;;  %v1088_v40 = vrot.slane %v830_v25, 1 }
 0x1ca   : > { %v1181_v49 = vsel %vm561_vm0, %v1179_v12, %v1180_v13  ;;  %v1183_v32 = vsel %vm561_vm0, %v1180_v13, %v1182_v27  ;;  %v833_v33 = vpop.f32.mrb[39].mxu1 }
 0x1cb   : > { %v1579_v34 = vpack.c.bf16 %v1283_v30, %v1283_v30  ;;  %v1580_v14 = vpack.c.bf16 %v1284_v47, %v1284_v47  ;;  %v1223_v36 = vadd.f32 %v1181_v49, %v1127_v23  ;;  %v1224_v29 = vadd.f32 %v1183_v32, %v1128_v24 }
 0x1cc   : > { %v1089_v42 = vrot.slane %v833_v33, 1  ;;  %v1732_v44 = vpop.f32.mrb[36].mxu0 }
 0x1cd   : > { %1364 = vst.msk [vmem:[%s2208_s26 + $0x18] sm:$0xf] %vm1357_vm5, %v1579_v34  ;;  %1365 = vst.msk [vmem:[%s2208_s26 + $0x1c] sm:$0xf] %vm1357_vm5, %v1580_v14  ;;  %v1246_v46 = vmul.f32 %v2192_v22, %v1223_v36  ;;  %v1247_v48 = vmul.f32 %v2192_v22, %v1224_v29  ;;  %v994_v50 = vpop.f32.mrb[37].mxu0  ;;  %v1187_v62 = vrot.slane %v1732_v44, 2 }
 0x1ce   : > { %v1090_v52 = vsel %vm1062_vm4, %v1088_v40, %v1089_v42  ;;  %v1092_v54 = vsel %vm1062_vm4, %v1089_v42, %v1091_v38  ;;  %v1733_v56 = vpop.f32.mrb[38].mxu0  ;;  %v1184_v63 = vrot.slane %v994_v50, 2 }
 0x1cf   : > { %v1269_v58 = vadd.f32 %v2197_v28, %v1246_v46  ;;  %v1270_v39 = vadd.f32 %v2197_v28, %v1247_v48  ;;  %v1129_v41 = vadd.f32 %v1090_v52, %v2163_v35  ;;  %v1130_v59 = vadd.f32 %v1092_v54, %v2165_v37  ;;  %v1702_v60 = vpop.f32.mrb[40].mxu1  ;;  %v997_v61 = vpop.f32.mrb[39].mxu0 }
 0x1d0   : > { %v1185_v0 = vrot.slane %v997_v61, 2  ;;  %v845_v1 = vpop.f32.mrb[41].mxu1  ;;  %v1096_v15 = vrot.slane %v1702_v60, 1 }
 0x1d1   : > { %v1285_v3 = vmax.f32 %v1269_v58, 0.0  ;;  %v1286_v4 = vmax.f32 %v1270_v39, 0.0  ;;  %v1703_v5 = vpop.f32.mrb[42].mxu1  ;;  %v1093_v16 = vrot.slane %v845_v1, 1 }
 0x1d2   : > { %v1186_v55 = vsel %vm561_vm0, %v1184_v63, %v1185_v0  ;;  %v1188_v6 = vsel %vm561_vm0, %v1185_v0, %v1187_v62  ;;  %v848_v57 = vpop.f32.mrb[43].mxu1 }
 0x1d3   : > { %v1581_v2 = vpack.c.bf16 %v1285_v3, %v1285_v3  ;;  %v1582_v35 = vpack.c.bf16 %v1286_v4, %v1286_v4  ;;  %v1225_v11 = vadd.f32 %v1186_v55, %v1129_v41  ;;  %v1226_v37 = vadd.f32 %v1188_v6, %v1130_v59 }
 0x1d4   : > { %v1094_v7 = vrot.slane %v848_v57, 1  ;;  %v1736_v17 = vpop.f32.mrb[40].mxu0 }
 0x1d5   : > { %1366 = vst.msk [vmem:[%s2208_s26 + $0x20] sm:$0xf] %vm1357_vm5, %v1581_v2  ;;  %1367 = vst.msk [vmem:[%s2208_s26 + $0x24] sm:$0xf] %vm1357_vm5, %v1582_v35  ;;  %v1248_v18 = vmul.f32 %v2192_v22, %v1225_v11  ;;  %v1249_v19 = vmul.f32 %v2192_v22, %v1226_v37  ;;  %v1009_v8 = vpop.f32.mrb[41].mxu0  ;;  %v1192_v13 = vrot.slane %v1736_v17, 2 }
 0x1d6   : > { %v1095_v20 = vsel %vm1062_vm4, %v1093_v16, %v1094_v7  ;;  %v1097_v9 = vsel %vm1062_vm4, %v1094_v7, %v1096_v15  ;;  %v1737_v21 = vpop.f32.mrb[42].mxu0  ;;  %v1189_v25 = vrot.slane %v1009_v8, 2 }
 0x1d7   : > { %v1271_v23 = vadd.f32 %v2197_v28, %v1248_v18  ;;  %v1272_v24 = vadd.f32 %v2197_v28, %v1249_v19  ;;  %v1131_v10 = vadd.f32 %v1095_v20, %v2167_v43  ;;  %v1132_v26 = vadd.f32 %v1097_v9, %v2169_v45  ;;  %v1706_v27 = vpop.f32.mrb[44].mxu1  ;;  %v1012_v12 = vpop.f32.mrb[43].mxu0 }
 0x1d8   : > { %v1190_v30 = vrot.slane %v1012_v12, 2  ;;  %v860_v47 = vpop.f32.mrb[45].mxu1  ;;  %v1101_v38 = vrot.slane %v1706_v27, 1 }
 0x1d9   : > { %v1287_v31 = vmax.f32 %v1271_v23, 0.0  ;;  %v1288_v49 = vmax.f32 %v1272_v24, 0.0  ;;  %v1707_v32 = vpop.f32.mrb[46].mxu1  ;;  %v1098_v40 = vrot.slane %v860_v47, 1 }
 0x1da   : > { %v1191_v33 = vsel %vm561_vm0, %v1189_v25, %v1190_v30  ;;  %v1193_v34 = vsel %vm561_vm0, %v1190_v30, %v1192_v13  ;;  %v863_v14 = vpop.f32.mrb[47].mxu1 }
 0x1db   : > { %v1583_v36 = vpack.c.bf16 %v1287_v31, %v1287_v31  ;;  %v1584_v43 = vpack.c.bf16 %v1288_v49, %v1288_v49  ;;  %v1227_v29 = vadd.f32 %v1191_v33, %v1131_v10  ;;  %v1228_v45 = vadd.f32 %v1193_v34, %v1132_v26 }
 0x1dc   : > { %v1099_v42 = vrot.slane %v863_v14, 1  ;;  %v1740_v44 = vpop.f32.mrb[44].mxu0 }
 0x1dd   : > { %1368 = vst.msk [vmem:[%s2208_s26 + $0x28] sm:$0xf] %vm1357_vm5, %v1583_v36  ;;  %1369 = vst.msk [vmem:[%s2208_s26 + $0x2c] sm:$0xf] %vm1357_vm5, %v1584_v43  ;;  %v1250_v46 = vmul.f32 %v2192_v22, %v1227_v29  ;;  %v1251_v48 = vmul.f32 %v2192_v22, %v1228_v45  ;;  %v1024_v50 = vpop.f32.mrb[45].mxu0  ;;  %v1197_v61 = vrot.slane %v1740_v44, 2 }
 0x1de   : > { %v1100_v52 = vsel %vm1062_vm4, %v1098_v40, %v1099_v42  ;;  %v1102_v54 = vsel %vm1062_vm4, %v1099_v42, %v1101_v38  ;;  %v1741_v56 = vpop.f32.mrb[46].mxu0  ;;  %v1194_v62 = vrot.slane %v1024_v50, 2 }
 0x1df   : > { %v1273_v58 = vadd.f32 %v2197_v28, %v1250_v46  ;;  %v1274_v39 = vadd.f32 %v2197_v28, %v1251_v48  ;;  %v1133_v41 = vadd.f32 %v1100_v52, %v2175_v51  ;;  %v1134_v59 = vadd.f32 %v1102_v54, %v2177_v53  ;;  %v1027_v60 = vpop.f32.mrb[47].mxu0 }
 0x1e0   : > { %v1195_v63 = vrot.slane %v1027_v60, 2 }
 0x1e1   : > { %v1289_v0 = vmax.f32 %v1273_v58, 0.0  ;;  %v1290_v1 = vmax.f32 %v1274_v39, 0.0 }
 0x1e2   : > { %v1196_v3 = vsel %vm561_vm0, %v1194_v62, %v1195_v63  ;;  %v1198_v4 = vsel %vm561_vm0, %v1195_v63, %v1197_v61 }
 0x1e3   : > { %v1585_v5 = vpack.c.bf16 %v1289_v0, %v1289_v0  ;;  %v1586_v55 = vpack.c.bf16 %v1290_v1, %v1290_v1  ;;  %v1229_v6 = vadd.f32 %v1196_v3, %v1133_v41  ;;  %v1230_v57 = vadd.f32 %v1198_v4, %v1134_v59 }
 0x1e5   : > { %1370 = vst.msk [vmem:[%s2208_s26 + $0x30] sm:$0xf] %vm1357_vm5, %v1585_v5  ;;  %1371 = vst.msk [vmem:[%s2208_s26 + $0x34] sm:$0xf] %vm1357_vm5, %v1586_v55  ;;  %v1252_v51 = vmul.f32 %v2192_v22, %v1229_v6  ;;  %v1253_v53 = vmul.f32 %v2192_v22, %v1230_v57 }
 0x1e7   : > { %v1275_v2 = vadd.f32 %v2197_v28, %v1252_v51  ;;  %v1276_v35 = vadd.f32 %v2197_v28, %v1253_v53 }
 0x1e9   : > { %v1291_v11 = vmax.f32 %v1275_v2, 0.0  ;;  %v1292_v37 = vmax.f32 %v1276_v35, 0.0 }
 0x1eb   : > { %v1587_v15 = vpack.c.bf16 %v1291_v11, %v1291_v11  ;;  %v1588_v16 = vpack.c.bf16 %v1292_v37, %v1292_v37 }
 0x1ed   : > { %1372 = vst.msk [vmem:[%s2208_s26 + $0x38] sm:$0xf] %vm1357_vm5, %v1587_v15  ;;  %1373 = vst.msk [vmem:[%s2208_s26 + $0x3c] sm:$0xf] %vm1357_vm5, %v1588_v16 }
 0x1ee PF: > { %s14_s19 = sadd.s32 1, %s1853_s19   ;;  %s2328_s15 = smov %s1845_s17 }
 0x1ef   : > { %p11_p7 = scmp.ge.s32.totalorder %s14_s19, 6   ;;  %s2329_s16 = smov %s1849_s18 }
 0x1f0   : > { %s2330_s17 = smov %s2333_s20  ;;  %s2331_s18 = smov %s2337_s21 }
 0x1f1   :  { %13 = sbr.rel (!%p11_p7) target bundleno = 3 (0x3), region = 68 }

</bundles_post_ra>
